<compile_context>
chip_gen: v7x
topology: tpu7x:2x2x1
jax: 0.10.0
libtpu: 0.0.40
codegen_flags: <defaults>
</compile_context>

<pallas_src>
import functools

import jax
import jax.numpy as jnp
from jax.experimental import pallas as pl
from jax.experimental.pallas import tpu as pltpu


def _elu(v):
    return jnp.where(v > 0, v, jnp.exp(v) - 1.0)


def gat3_kernel(x_ref, maskb_ref, w1_ref, b1_ref, w2_ref, b2_ref, w3_ref, b3_ref,
                out_ref, *, heads, hidden_dim, output_dim):
    mask_bias = maskb_ref[...]        # (N, N): 0 on edges/self-loops, -1e30 elsewhere

    def gat_layer(x, w_aug, bias, n_heads, c):
        hc = n_heads * c
        # One MXU matmul produces transformed features AND both folded attention
        # projections: z = [ x@W | (x@W).a_src | (x@W).a_dst ]  -> (N, H*C + 2H).
        z = jnp.dot(x, w_aug, preferred_element_type=jnp.float32)
        xw = z[:, :hc]                                   # (N, H*C)
        # Single small transpose brings per-head logits to (2H, N).
        al = z[:, hc:hc + 2 * n_heads].T                 # (2H, N)
        src = al[:n_heads]                               # (H, N) -> j axis (lanes)
        dst = al[n_heads:]                               # (H, N) -> i axis (sublanes)
        # Head-batched logits: e[h, i, j] = alpha_dst[i, h] + alpha_src[j, h]
        e = dst[:, :, None] + src[:, None, :]            # (H, N, N)
        e = jnp.maximum(e, 0.2 * e)                      # LeakyReLU(0.2), single VPU op
        e = e + mask_bias[None, :, :]                    # additive non-edge mask
        e = e - jnp.max(e, axis=-1, keepdims=True)
        p = jnp.exp(e)
        attn = p * pl.reciprocal(jnp.sum(p, axis=-1, keepdims=True), approx=True)
        # Per-head neighbourhood aggregation (tiny unrolled MXU matmuls).
        outs = [jnp.dot(attn[h], xw[:, h * c:(h + 1) * c],
                        preferred_element_type=jnp.float32)
                for h in range(n_heads)]
        o = outs[0] if n_heads == 1 else jnp.concatenate(outs, axis=1)
        return o + bias                                  # bias fused on full width

    # conv1: input_dim -> hidden_dim, heads=4, concat=True, + bias, ELU
    h = _elu(gat_layer(x_ref[...], w1_ref[...], b1_ref[...], heads, hidden_dim))
    # conv2: 4*hidden -> hidden, heads=4, concat=True, + bias, ELU
    h = _elu(gat_layer(h, w2_ref[...], b2_ref[...], heads, hidden_dim))
    # conv3: 4*hidden -> output_dim, heads=1, concat=False (mean of 1 head), no ELU
    out = gat_layer(h, w3_ref[...], b3_ref[...], 1, output_dim)
    out_ref[...] = out.astype(out_ref.dtype)


def _fold_attention_into_weights(w, a_src, a_dst):
    """W_aug = [ W | W.a_src (per head) | W.a_dst (per head) ] -> (F_in, H*C + 2H)."""
    heads, c = a_src.shape
    w_r = w.reshape(w.shape[0], heads, c)
    src_proj = jnp.einsum("fhc,hc->fh", w_r, a_src)      # (F_in, H)
    dst_proj = jnp.einsum("fhc,hc->fh", w_r, a_dst)      # (F_in, H)
    return jnp.concatenate([w, src_proj, dst_proj], axis=1)


@functools.partial(jax.jit, static_argnums=(3, 4, 5))
def gat_forward(params, x, adj, hidden_dim, output_dim, heads=4):
    n = x.shape[0]
    w1 = _fold_attention_into_weights(params["w1"], params["as1"], params["ad1"])
    w2 = _fold_attention_into_weights(params["w2"], params["as2"], params["ad2"])
    w3 = _fold_attention_into_weights(params["w3"], params["as3"], params["ad3"])
    # Additive softmax mask: 0 on edges / self-loops, -1e30 elsewhere.
    mask_bias = jnp.where(adj > 0, 0.0, -1e30).astype(jnp.float32)

    kernel = functools.partial(gat3_kernel, heads=heads,
                               hidden_dim=hidden_dim, output_dim=output_dim)
    vmem = pl.BlockSpec(memory_space=pltpu.MemorySpace.VMEM)
    out = pl.pallas_call(
        kernel,
        out_shape=jax.ShapeDtypeStruct((n, output_dim), jnp.float32),
        in_specs=[vmem] * 8,
        out_specs=vmem,
    )(x, mask_bias, w1, params["b1"], w2, params["b2"], w3, params["b3"])
    return out.reshape(-1)      # x.view(-1)


def build_dense_adj(edge_index, num_nodes):
    # adj[dst, src] = 1 for every edge src->dst, plus self loops (GATConv default).
    src, dst = edge_index[0], edge_index[1]
    adj = jnp.zeros((num_nodes, num_nodes), jnp.float32)
    adj = adj.at[dst, src].set(1.0)
    adj = jnp.maximum(adj, jnp.eye(num_nodes, dtype=jnp.float32))
    return adj


def init_gat_params(key, input_dim, hidden_dim, output_dim):
    def dense(k, shape):
        return jax.random.normal(k, shape, jnp.float32) * 0.1

    ks = jax.random.split(key, 12)
    return {
        # conv1: input_dim -> hidden_dim, heads=4, concat
        "w1": dense(ks[0], (input_dim, 4 * hidden_dim)),
        "as1": dense(ks[1], (4, hidden_dim)),
        "ad1": dense(ks[2], (4, hidden_dim)),
        "b1": dense(ks[3], (1, 4 * hidden_dim)),
        # conv2: 4*hidden_dim -> hidden_dim, heads=4, concat
        "w2": dense(ks[4], (4 * hidden_dim, 4 * hidden_dim)),
        "as2": dense(ks[5], (4, hidden_dim)),
        "ad2": dense(ks[6], (4, hidden_dim)),
        "b2": dense(ks[7], (1, 4 * hidden_dim)),
        # conv3: 4*hidden_dim -> output_dim, heads=1, mean
        "w3": dense(ks[8], (4 * hidden_dim, output_dim)),
        "as3": dense(ks[9], (1, output_dim)),
        "ad3": dense(ks[10], (1, output_dim)),
        "b3": dense(ks[11], (1, output_dim)),
    }


if __name__ == "__main__":
    N = 16            # number of graph nodes
    INPUT_DIM = 8
    HIDDEN_DIM = 8
    OUTPUT_DIM = 4

    key = jax.random.PRNGKey(0)
    k_x, k_p = jax.random.split(key)

    x = jax.random.normal(k_x, (N, INPUT_DIM), jnp.float32)

    # Deterministic edge set: bidirectional ring + a few long-range edges.
    src = list(range(N)) + [(i + 1) % N for i in range(N)] + [0, 3, 5, 7, 9, 11, 13, 15]
    dst = [(i + 1) % N for i in range(N)] + list(range(N)) + [8, 11, 13, 15, 1, 3, 5, 7]
    edge_index = jnp.array([src, dst], dtype=jnp.int32)   # (2, E)

    adj = build_dense_adj(edge_index, N)
    params = init_gat_params(k_p, INPUT_DIM, HIDDEN_DIM, OUTPUT_DIM)

    out = gat_forward(params, x, adj, HIDDEN_DIM, OUTPUT_DIM)
    out = jax.block_until_ready(out)

    assert out.shape == (N * OUTPUT_DIM,)
    assert bool(jnp.all(jnp.isfinite(out)))
    print("KERNEL_OK")
</pallas_src>

<mosaic_0001>
module attributes {stable_mosaic.version = 11 : i64} {
  func.func @gat3_kernel(%arg0: memref<16x8xf32, #tpu.memory_space<vmem>>, %arg1: memref<16x16xf32, #tpu.memory_space<vmem>>, %arg2: memref<8x40xf32, #tpu.memory_space<vmem>>, %arg3: memref<1x32xf32, #tpu.memory_space<vmem>>, %arg4: memref<32x40xf32, #tpu.memory_space<vmem>>, %arg5: memref<1x32xf32, #tpu.memory_space<vmem>>, %arg6: memref<32x6xf32, #tpu.memory_space<vmem>>, %arg7: memref<1x4xf32, #tpu.memory_space<vmem>>, %arg8: memref<16x4xf32, #tpu.memory_space<vmem>>) attributes {dimension_semantics = [], scalar_prefetch = 0 : i64, scratch_operands = 0 : i64, tpu.core_type = #tpu.core_type<tc>} {
    %c0 = arith.constant 0 : index
    %c0_0 = arith.constant 0 : index
    %0 = vector.load %arg1[%c0, %c0_0] : memref<16x16xf32, #tpu.memory_space<vmem>>, vector<16x16xf32>
    %c0_1 = arith.constant 0 : index
    %c0_2 = arith.constant 0 : index
    %1 = vector.load %arg0[%c0_1, %c0_2] : memref<16x8xf32, #tpu.memory_space<vmem>>, vector<16x8xf32>
    %c0_3 = arith.constant 0 : index
    %c0_4 = arith.constant 0 : index
    %2 = vector.load %arg2[%c0_3, %c0_4] : memref<8x40xf32, #tpu.memory_space<vmem>>, vector<8x40xf32>
    %c0_5 = arith.constant 0 : index
    %c0_6 = arith.constant 0 : index
    %3 = vector.load %arg3[%c0_5, %c0_6] : memref<1x32xf32, #tpu.memory_space<vmem>>, vector<1x32xf32>
    %cst = arith.constant dense<0.000000e+00> : vector<16x40xf32>
    %4 = tpu.matmul %1, %2, %cst {dimension_numbers = #tpu.dot_dimension_numbers<[1], [0], [0], [1], [0, 0, 1, 1], [], []>} : vector<16x8xf32>, vector<8x40xf32>, vector<16x40xf32> -> vector<16x40xf32>
    %5 = vector.extract_strided_slice %4 {offsets = [0, 0], sizes = [16, 32], strides = [1, 1]} : vector<16x40xf32> to vector<16x32xf32>
    %6 = vector.extract_strided_slice %4 {offsets = [0, 32], sizes = [16, 8], strides = [1, 1]} : vector<16x40xf32> to vector<16x8xf32>
    %7 = tpu.transpose %6, [1, 0] : vector<16x8xf32> -> vector<8x16xf32>
    %8 = vector.extract_strided_slice %7 {offsets = [0, 0], sizes = [4, 16], strides = [1, 1]} : vector<8x16xf32> to vector<4x16xf32>
    %9 = vector.extract_strided_slice %7 {offsets = [4, 0], sizes = [4, 16], strides = [1, 1]} : vector<8x16xf32> to vector<4x16xf32>
    %10 = vector.shape_cast %9 : vector<4x16xf32> to vector<4x16x1xf32>
    %11 = vector.shape_cast %8 : vector<4x16xf32> to vector<4x1x16xf32>
    %12 = vector.broadcast %10 : vector<4x16x1xf32> to vector<4x16x16xf32>
    %13 = vector.broadcast %11 : vector<4x1x16xf32> to vector<4x16x16xf32>
    %14 = arith.addf %12, %13 : vector<4x16x16xf32>
    %cst_7 = arith.constant 2.000000e-01 : f32
    %15 = vector.broadcast %cst_7 : f32 to vector<4x16x16xf32>
    %16 = arith.mulf %15, %14 : vector<4x16x16xf32>
    %17 = arith.maximumf %14, %16 : vector<4x16x16xf32>
    %18 = vector.shape_cast %0 : vector<16x16xf32> to vector<1x16x16xf32>
    %19 = vector.broadcast %18 : vector<1x16x16xf32> to vector<4x16x16xf32>
    %20 = arith.addf %17, %19 : vector<4x16x16xf32>
    %cst_8 = arith.constant dense<0xFF800000> : vector<4x16xf32>
    %21 = vector.multi_reduction <maximumf>, %20, %cst_8 [2] : vector<4x16x16xf32> to vector<4x16xf32>
    %22 = vector.shape_cast %21 : vector<4x16xf32> to vector<4x16x1xf32>
    %23 = vector.broadcast %22 : vector<4x16x1xf32> to vector<4x16x16xf32>
    %24 = arith.subf %20, %23 : vector<4x16x16xf32>
    %25 = math.exp %24 : vector<4x16x16xf32>
    %cst_9 = arith.constant dense<0.000000e+00> : vector<4x16xf32>
    %26 = vector.multi_reduction <add>, %25, %cst_9 [2] : vector<4x16x16xf32> to vector<4x16xf32>
    %27 = vector.shape_cast %26 : vector<4x16xf32> to vector<4x16x1xf32>
    %28 = tpu.reciprocal %27 {approx = true} : vector<4x16x1xf32> -> vector<4x16x1xf32>
    %29 = vector.broadcast %28 : vector<4x16x1xf32> to vector<4x16x16xf32>
    %30 = arith.mulf %25, %29 : vector<4x16x16xf32>
    %31 = vector.extract_strided_slice %30 {offsets = [0, 0, 0], sizes = [1, 16, 16], strides = [1, 1, 1]} : vector<4x16x16xf32> to vector<1x16x16xf32>
    %32 = vector.shape_cast %31 : vector<1x16x16xf32> to vector<16x16xf32>
    %33 = vector.extract_strided_slice %5 {offsets = [0, 0], sizes = [16, 8], strides = [1, 1]} : vector<16x32xf32> to vector<16x8xf32>
    %cst_10 = arith.constant dense<0.000000e+00> : vector<16x8xf32>
    %34 = tpu.matmul %32, %33, %cst_10 {dimension_numbers = #tpu.dot_dimension_numbers<[1], [0], [0], [1], [0, 0, 1, 1], [], []>} : vector<16x16xf32>, vector<16x8xf32>, vector<16x8xf32> -> vector<16x8xf32>
    %35 = vector.extract_strided_slice %30 {offsets = [1, 0, 0], sizes = [1, 16, 16], strides = [1, 1, 1]} : vector<4x16x16xf32> to vector<1x16x16xf32>
    %36 = vector.shape_cast %35 : vector<1x16x16xf32> to vector<16x16xf32>
    %37 = vector.extract_strided_slice %5 {offsets = [0, 8], sizes = [16, 8], strides = [1, 1]} : vector<16x32xf32> to vector<16x8xf32>
    %cst_11 = arith.constant dense<0.000000e+00> : vector<16x8xf32>
    %38 = tpu.matmul %36, %37, %cst_11 {dimension_numbers = #tpu.dot_dimension_numbers<[1], [0], [0], [1], [0, 0, 1, 1], [], []>} : vector<16x16xf32>, vector<16x8xf32>, vector<16x8xf32> -> vector<16x8xf32>
    %39 = vector.extract_strided_slice %30 {offsets = [2, 0, 0], sizes = [1, 16, 16], strides = [1, 1, 1]} : vector<4x16x16xf32> to vector<1x16x16xf32>
    %40 = vector.shape_cast %39 : vector<1x16x16xf32> to vector<16x16xf32>
    %41 = vector.extract_strided_slice %5 {offsets = [0, 16], sizes = [16, 8], strides = [1, 1]} : vector<16x32xf32> to vector<16x8xf32>
    %cst_12 = arith.constant dense<0.000000e+00> : vector<16x8xf32>
    %42 = tpu.matmul %40, %41, %cst_12 {dimension_numbers = #tpu.dot_dimension_numbers<[1], [0], [0], [1], [0, 0, 1, 1], [], []>} : vector<16x16xf32>, vector<16x8xf32>, vector<16x8xf32> -> vector<16x8xf32>
    %43 = vector.extract_strided_slice %30 {offsets = [3, 0, 0], sizes = [1, 16, 16], strides = [1, 1, 1]} : vector<4x16x16xf32> to vector<1x16x16xf32>
    %44 = vector.shape_cast %43 : vector<1x16x16xf32> to vector<16x16xf32>
    %45 = vector.extract_strided_slice %5 {offsets = [0, 24], sizes = [16, 8], strides = [1, 1]} : vector<16x32xf32> to vector<16x8xf32>
    %cst_13 = arith.constant dense<0.000000e+00> : vector<16x8xf32>
    %46 = tpu.matmul %44, %45, %cst_13 {dimension_numbers = #tpu.dot_dimension_numbers<[1], [0], [0], [1], [0, 0, 1, 1], [], []>} : vector<16x16xf32>, vector<16x8xf32>, vector<16x8xf32> -> vector<16x8xf32>
    %47 = tpu.concatenate %34, %38, %42, %46 in 1 : vector<16x8xf32>, vector<16x8xf32>, vector<16x8xf32>, vector<16x8xf32> -> vector<16x32xf32>
    %48 = vector.broadcast %3 : vector<1x32xf32> to vector<16x32xf32>
    %49 = arith.addf %47, %48 : vector<16x32xf32>
    %cst_14 = arith.constant 0.000000e+00 : f32
    %50 = vector.broadcast %cst_14 : f32 to vector<16x32xf32>
    %51 = arith.cmpf ogt, %49, %50 : vector<16x32xf32>
    %52 = math.exp %49 : vector<16x32xf32>
    %cst_15 = arith.constant 1.000000e+00 : f32
    %53 = vector.broadcast %cst_15 : f32 to vector<16x32xf32>
    %54 = arith.subf %52, %53 : vector<16x32xf32>
    %55 = arith.select %51, %49, %54 : vector<16x32xi1>, vector<16x32xf32>
    %c0_16 = arith.constant 0 : index
    %c0_17 = arith.constant 0 : index
    %56 = vector.load %arg4[%c0_16, %c0_17] : memref<32x40xf32, #tpu.memory_space<vmem>>, vector<32x40xf32>
    %c0_18 = arith.constant 0 : index
    %c0_19 = arith.constant 0 : index
    %57 = vector.load %arg5[%c0_18, %c0_19] : memref<1x32xf32, #tpu.memory_space<vmem>>, vector<1x32xf32>
    %cst_20 = arith.constant dense<0.000000e+00> : vector<16x40xf32>
    %58 = tpu.matmul %55, %56, %cst_20 {dimension_numbers = #tpu.dot_dimension_numbers<[1], [0], [0], [1], [0, 0, 1, 1], [], []>} : vector<16x32xf32>, vector<32x40xf32>, vector<16x40xf32> -> vector<16x40xf32>
    %59 = vector.extract_strided_slice %58 {offsets = [0, 0], sizes = [16, 32], strides = [1, 1]} : vector<16x40xf32> to vector<16x32xf32>
    %60 = vector.extract_strided_slice %58 {offsets = [0, 32], sizes = [16, 8], strides = [1, 1]} : vector<16x40xf32> to vector<16x8xf32>
    %61 = tpu.transpose %60, [1, 0] : vector<16x8xf32> -> vector<8x16xf32>
    %62 = vector.extract_strided_slice %61 {offsets = [0, 0], sizes = [4, 16], strides = [1, 1]} : vector<8x16xf32> to vector<4x16xf32>
    %63 = vector.extract_strided_slice %61 {offsets = [4, 0], sizes = [4, 16], strides = [1, 1]} : vector<8x16xf32> to vector<4x16xf32>
    %64 = vector.shape_cast %63 : vector<4x16xf32> to vector<4x16x1xf32>
    %65 = vector.shape_cast %62 : vector<4x16xf32> to vector<4x1x16xf32>
    %66 = vector.broadcast %64 : vector<4x16x1xf32> to vector<4x16x16xf32>
    %67 = vector.broadcast %65 : vector<4x1x16xf32> to vector<4x16x16xf32>
    %68 = arith.addf %66, %67 : vector<4x16x16xf32>
    %cst_21 = arith.constant 2.000000e-01 : f32
    %69 = vector.broadcast %cst_21 : f32 to vector<4x16x16xf32>
    %70 = arith.mulf %69, %68 : vector<4x16x16xf32>
    %71 = arith.maximumf %68, %70 : vector<4x16x16xf32>
    %72 = vector.shape_cast %0 : vector<16x16xf32> to vector<1x16x16xf32>
    %73 = vector.broadcast %72 : vector<1x16x16xf32> to vector<4x16x16xf32>
    %74 = arith.addf %71, %73 : vector<4x16x16xf32>
    %cst_22 = arith.constant dense<0xFF800000> : vector<4x16xf32>
    %75 = vector.multi_reduction <maximumf>, %74, %cst_22 [2] : vector<4x16x16xf32> to vector<4x16xf32>
    %76 = vector.shape_cast %75 : vector<4x16xf32> to vector<4x16x1xf32>
    %77 = vector.broadcast %76 : vector<4x16x1xf32> to vector<4x16x16xf32>
    %78 = arith.subf %74, %77 : vector<4x16x16xf32>
    %79 = math.exp %78 : vector<4x16x16xf32>
    %cst_23 = arith.constant dense<0.000000e+00> : vector<4x16xf32>
    %80 = vector.multi_reduction <add>, %79, %cst_23 [2] : vector<4x16x16xf32> to vector<4x16xf32>
    %81 = vector.shape_cast %80 : vector<4x16xf32> to vector<4x16x1xf32>
    %82 = tpu.reciprocal %81 {approx = true} : vector<4x16x1xf32> -> vector<4x16x1xf32>
    %83 = vector.broadcast %82 : vector<4x16x1xf32> to vector<4x16x16xf32>
    %84 = arith.mulf %79, %83 : vector<4x16x16xf32>
    %85 = vector.extract_strided_slice %84 {offsets = [0, 0, 0], sizes = [1, 16, 16], strides = [1, 1, 1]} : vector<4x16x16xf32> to vector<1x16x16xf32>
    %86 = vector.shape_cast %85 : vector<1x16x16xf32> to vector<16x16xf32>
    %87 = vector.extract_strided_slice %59 {offsets = [0, 0], sizes = [16, 8], strides = [1, 1]} : vector<16x32xf32> to vector<16x8xf32>
    %cst_24 = arith.constant dense<0.000000e+00> : vector<16x8xf32>
    %88 = tpu.matmul %86, %87, %cst_24 {dimension_numbers = #tpu.dot_dimension_numbers<[1], [0], [0], [1], [0, 0, 1, 1], [], []>} : vector<16x16xf32>, vector<16x8xf32>, vector<16x8xf32> -> vector<16x8xf32>
    %89 = vector.extract_strided_slice %84 {offsets = [1, 0, 0], sizes = [1, 16, 16], strides = [1, 1, 1]} : vector<4x16x16xf32> to vector<1x16x16xf32>
    %90 = vector.shape_cast %89 : vector<1x16x16xf32> to vector<16x16xf32>
    %91 = vector.extract_strided_slice %59 {offsets = [0, 8], sizes = [16, 8], strides = [1, 1]} : vector<16x32xf32> to vector<16x8xf32>
    %cst_25 = arith.constant dense<0.000000e+00> : vector<16x8xf32>
    %92 = tpu.matmul %90, %91, %cst_25 {dimension_numbers = #tpu.dot_dimension_numbers<[1], [0], [0], [1], [0, 0, 1, 1], [], []>} : vector<16x16xf32>, vector<16x8xf32>, vector<16x8xf32> -> vector<16x8xf32>
    %93 = vector.extract_strided_slice %84 {offsets = [2, 0, 0], sizes = [1, 16, 16], strides = [1, 1, 1]} : vector<4x16x16xf32> to vector<1x16x16xf32>
    %94 = vector.shape_cast %93 : vector<1x16x16xf32> to vector<16x16xf32>
    %95 = vector.extract_strided_slice %59 {offsets = [0, 16], sizes = [16, 8], strides = [1, 1]} : vector<16x32xf32> to vector<16x8xf32>
    %cst_26 = arith.constant dense<0.000000e+00> : vector<16x8xf32>
    %96 = tpu.matmul %94, %95, %cst_26 {dimension_numbers = #tpu.dot_dimension_numbers<[1], [0], [0], [1], [0, 0, 1, 1], [], []>} : vector<16x16xf32>, vector<16x8xf32>, vector<16x8xf32> -> vector<16x8xf32>
    %97 = vector.extract_strided_slice %84 {offsets = [3, 0, 0], sizes = [1, 16, 16], strides = [1, 1, 1]} : vector<4x16x16xf32> to vector<1x16x16xf32>
    %98 = vector.shape_cast %97 : vector<1x16x16xf32> to vector<16x16xf32>
    %99 = vector.extract_strided_slice %59 {offsets = [0, 24], sizes = [16, 8], strides = [1, 1]} : vector<16x32xf32> to vector<16x8xf32>
    %cst_27 = arith.constant dense<0.000000e+00> : vector<16x8xf32>
    %100 = tpu.matmul %98, %99, %cst_27 {dimension_numbers = #tpu.dot_dimension_numbers<[1], [0], [0], [1], [0, 0, 1, 1], [], []>} : vector<16x16xf32>, vector<16x8xf32>, vector<16x8xf32> -> vector<16x8xf32>
    %101 = tpu.concatenate %88, %92, %96, %100 in 1 : vector<16x8xf32>, vector<16x8xf32>, vector<16x8xf32>, vector<16x8xf32> -> vector<16x32xf32>
    %102 = vector.broadcast %57 : vector<1x32xf32> to vector<16x32xf32>
    %103 = arith.addf %101, %102 : vector<16x32xf32>
    %cst_28 = arith.constant 0.000000e+00 : f32
    %104 = vector.broadcast %cst_28 : f32 to vector<16x32xf32>
    %105 = arith.cmpf ogt, %103, %104 : vector<16x32xf32>
    %106 = math.exp %103 : vector<16x32xf32>
    %cst_29 = arith.constant 1.000000e+00 : f32
    %107 = vector.broadcast %cst_29 : f32 to vector<16x32xf32>
    %108 = arith.subf %106, %107 : vector<16x32xf32>
    %109 = arith.select %105, %103, %108 : vector<16x32xi1>, vector<16x32xf32>
    %c0_30 = arith.constant 0 : index
    %c0_31 = arith.constant 0 : index
    %110 = vector.load %arg6[%c0_30, %c0_31] : memref<32x6xf32, #tpu.memory_space<vmem>>, vector<32x6xf32>
    %c0_32 = arith.constant 0 : index
    %c0_33 = arith.constant 0 : index
    %111 = vector.load %arg7[%c0_32, %c0_33] : memref<1x4xf32, #tpu.memory_space<vmem>>, vector<1x4xf32>
    %cst_34 = arith.constant dense<0.000000e+00> : vector<16x6xf32>
    %112 = tpu.matmul %109, %110, %cst_34 {dimension_numbers = #tpu.dot_dimension_numbers<[1], [0], [0], [1], [0, 0, 1, 1], [], []>} : vector<16x32xf32>, vector<32x6xf32>, vector<16x6xf32> -> vector<16x6xf32>
    %113 = vector.extract_strided_slice %112 {offsets = [0, 0], sizes = [16, 4], strides = [1, 1]} : vector<16x6xf32> to vector<16x4xf32>
    %114 = vector.extract_strided_slice %112 {offsets = [0, 4], sizes = [16, 2], strides = [1, 1]} : vector<16x6xf32> to vector<16x2xf32>
    %115 = tpu.transpose %114, [1, 0] : vector<16x2xf32> -> vector<2x16xf32>
    %116 = vector.extract_strided_slice %115 {offsets = [0, 0], sizes = [1, 16], strides = [1, 1]} : vector<2x16xf32> to vector<1x16xf32>
    %117 = vector.extract_strided_slice %115 {offsets = [1, 0], sizes = [1, 16], strides = [1, 1]} : vector<2x16xf32> to vector<1x16xf32>
    %118 = vector.shape_cast %117 : vector<1x16xf32> to vector<1x16x1xf32>
    %119 = vector.shape_cast %116 : vector<1x16xf32> to vector<1x1x16xf32>
    %120 = vector.broadcast %118 : vector<1x16x1xf32> to vector<1x16x16xf32>
    %121 = vector.broadcast %119 : vector<1x1x16xf32> to vector<1x16x16xf32>
    %122 = arith.addf %120, %121 : vector<1x16x16xf32>
    %cst_35 = arith.constant 2.000000e-01 : f32
    %123 = vector.broadcast %cst_35 : f32 to vector<1x16x16xf32>
    %124 = arith.mulf %123, %122 : vector<1x16x16xf32>
    %125 = arith.maximumf %122, %124 : vector<1x16x16xf32>
    %126 = vector.shape_cast %0 : vector<16x16xf32> to vector<1x16x16xf32>
    %127 = arith.addf %125, %126 : vector<1x16x16xf32>
    %cst_36 = arith.constant dense<0xFF800000> : vector<1x16xf32>
    %128 = vector.multi_reduction <maximumf>, %127, %cst_36 [2] : vector<1x16x16xf32> to vector<1x16xf32>
    %129 = vector.shape_cast %128 : vector<1x16xf32> to vector<1x16x1xf32>
    %130 = vector.broadcast %129 : vector<1x16x1xf32> to vector<1x16x16xf32>
    %131 = arith.subf %127, %130 : vector<1x16x16xf32>
    %132 = math.exp %131 : vector<1x16x16xf32>
    %cst_37 = arith.constant dense<0.000000e+00> : vector<1x16xf32>
    %133 = vector.multi_reduction <add>, %132, %cst_37 [2] : vector<1x16x16xf32> to vector<1x16xf32>
    %134 = vector.shape_cast %133 : vector<1x16xf32> to vector<1x16x1xf32>
    %135 = tpu.reciprocal %134 {approx = true} : vector<1x16x1xf32> -> vector<1x16x1xf32>
    %136 = vector.broadcast %135 : vector<1x16x1xf32> to vector<1x16x16xf32>
    %137 = arith.mulf %132, %136 : vector<1x16x16xf32>
    %138 = vector.shape_cast %137 : vector<1x16x16xf32> to vector<16x16xf32>
    %cst_38 = arith.constant dense<0.000000e+00> : vector<16x4xf32>
    %139 = tpu.matmul %138, %113, %cst_38 {dimension_numbers = #tpu.dot_dimension_numbers<[1], [0], [0], [1], [0, 0, 1, 1], [], []>} : vector<16x16xf32>, vector<16x4xf32>, vector<16x4xf32> -> vector<16x4xf32>
    %140 = vector.broadcast %111 : vector<1x4xf32> to vector<16x4xf32>
    %141 = arith.addf %139, %140 : vector<16x4xf32>
    %c0_39 = arith.constant 0 : index
    %c0_40 = arith.constant 0 : index
    %142 = vector.load %arg8[%c0_39, %c0_40] : memref<16x4xf32, #tpu.memory_space<vmem>>, vector<16x4xf32>
    tpu.vector_store %arg8[%c0_39, %c0_40], %141 {strides = array<i32>} : memref<16x4xf32, #tpu.memory_space<vmem>>, vector<16x4xf32>,
    return
  }
}

</mosaic_0001>

<bundles_post_ra>
// kernel: gat_forward.1
= control target key start
LH: loop header
LB: loop body
LE: loop exit
PB: predicated region body
PF: predicated region fallthrough
CT: control target
= control target key end

     0   :  { %vm35_vm0 = vcmask 64512   ;;  %s2095_s11 = smov 96   ;;  %v157_v9 = vlaneseq  ;;  %v2096_v20 = vmov 1966171168   ;;  %vm278_vm1 = vcmask 130048   ;;  %s2097_s14 = smov 120   ;;  %s2381_s2 = inlined_call_operand.vmem [shape: f32[8,40], index: 2, kind: input, shape index: {}]   ;;  %s2382_s0 = inlined_call_operand.vmem [shape: f32[16,8], index: 0, kind: input, shape index: {}]   ;;  %s2383_s1 = inlined_call_operand.vmem [shape: f32[16,16], index: 1, kind: input, shape index: {}]   ;;  %s2384_s4 = inlined_call_operand.vmem [shape: f32[32,40], index: 4, kind: input, shape index: {}]   ;;  %s2385_s3 = inlined_call_operand.vmem [shape: f32[1,32], index: 3, kind: input, shape index: {}]   ;;  %s2386_s6 = inlined_call_operand.vmem [shape: f32[32,6], index: 6, kind: input, shape index: {}]   ;;  %s2387_s5 = inlined_call_operand.vmem [shape: f32[1,32], index: 5, kind: input, shape index: {}]   ;;  %s2388_s7 = inlined_call_operand.vmem [shape: f32[1,4], index: 7, kind: input, shape index: {}]   ;;  %s2389_s8 = inlined_call_operand.vmem [shape: f32[16,4], index: 8, kind: output, shape index: {}]  }
   0x1   :  { %v33_v0 = vld [vmem:[%s2381_s2] sm:$0xff]  ;;  %v32_v2 = vld [vmem:[%s2382_s0 + $0x8] sm:$0xff]  ;;  %v203_v21 = vunpack.c.l.s4 %v2096_v20  ;;  %s2098_s15 = smov 104   ;;  %s2099_s16 = smov 112   ;;  %vm737_vm2 = vcmask 195584   ;;  %vm763_vm3 = vcmask 261120  }
   0x2   :  { %v31_v1 = vld [vmem:[%s2382_s0] sm:$0xff]  ;;  %1831 = vmatprep.subr.mxu0 %v33_v0  ;;  %v2164_v10 = vshrl.u32 %v157_v9, 7  ;;  %v2192_v38 = vld [vmem:[%s2383_s1 + $0x8] sm:$0xff]  ;;  %s2100_s17 = smov 8   ;;  %s2101_s26 = smov 16   ;;  %vm1742_vm8 = vcmask 31744  }
   0x3   :  { %1833 = vmatprep.mubr.msk.f32.mxu0 %vm35_vm0, %v31_v1  ;;  %1832 = vmatpush3.msra.mxu0 %v33_v0  ;;  %v204_v22 = vunpack.c.0.s8 %v203_v21  ;;  %v2197_v39 = vld [vmem:[%s2383_s1] sm:$0xff]  ;;  %s2102_s27 = smov 24  }
   0x4   :  { %1834 = vmatmul.mubr.msk.f32.vlgmr.msra.gmra.mrb[0].mxu0 %vm35_vm0, %v32_v2  ;;  %v159_v11 = vsub.s32 4, %v2164_v10  ;;  %v170_v14 = vsub.s32 5, %v2164_v10  ;;  %v181_v16 = vsub.s32 6, %v2164_v10  ;;  %v192_v18 = vsub.s32 7, %v2164_v10 }
   0x5   :  { %v2179_v23 = vsub.s32 %v204_v22, %v2164_v10  ;;  %v2184_v26 = vsub.s32 0, %v2164_v10 }
  0xd7   :  { %v1835_v3 = vpop.f32.mrb[0].mxu0 }
  0xd8   :  { %v108_v4 = vpop.f32.mrb[1].mxu0 }
  0xd9   :  { %119 = vrot.lane.b32.xlu0 %v108_v4, %s2095_s11  ;;  %v1921_v5 = vpack.c.bf16 %v1835_v3, %v108_v4  ;;  %v2161_v6 = vpack.i.bf16 %v1835_v3, %v108_v4 }
  0xdb   :  { %1922 = vmatprep.subr.bf16.mxu1 %v1921_v5 }
  0xdc   :  { %1924 = vmatpush3.bf16.msra.mxu1 %v1921_v5 }
  0xdd   :  { %121 = vrot.lane.b32.xlu0 %v1835_v3, %s2095_s11 }
 0x14b   :  { %v120_v7 = vpop.permute.xlu0 %119 }
 0x14c   :  { %125 = vxpose.xlu1.b32.start [1/2] (short) (narrow) %v120_v7, 8 }
 0x14f   :  { %v122_v8 = vpop.permute.xlu0 %121 }
 0x150   :  { %126 = vxpose.xlu1.b32.end [2/2] (short) (narrow) %v122_v8, 8 }
 0x1cc   :  { %v141_v12 = vpop.trf.xlu1 }
 0x1cd   :  { %v160_v13 = vrot.slane %v141_v12, %v159_v11  ;;  %v171_v15 = vrot.slane %v141_v12, %v170_v14  ;;  %v182_v17 = vrot.slane %v141_v12, %v181_v16  ;;  %v193_v19 = vrot.slane %v141_v12, %v192_v18 }
 0x1ce   :  { %v208_v24 = vrot.slane %v141_v12, %v2179_v23 }
 0x1cf   :  { %166 = vbcast.lane.b32.xlu1 %v160_v13, 264  ;;  %162 = vbcast.lane.b32.xlu0 %v160_v13, 256 }
 0x1d0   :  { %v216_v25 = vrot.slane %v208_v24, %v2179_v23  ;;  %v209_v27 = vcombine.high %v208_v24, %v208_v24 }
 0x1d2   :  { %v229_v28 = vrot.slane %v216_v25, %v2184_v26  ;;  %v223_v29 = vrot.slane %v209_v27, %v2179_v23  ;;  %v224_v46 = vcombine.high %v216_v25, %v216_v25 }
 0x1d3   :  { %173 = vbcast.lane.b32.xlu0 %v171_v15, 256 }
 0x1d4   :  { %v233_v36 = vrot.slane %v223_v29, %v2184_v26  ;;  %v237_v53 = vrot.slane %v224_v46, %v2184_v26  ;;  %v225_v61 = vcombine.high %v223_v29, %v223_v29 }
 0x1d6   :  { %v241_v3 = vrot.slane %v225_v61, %v2184_v26 }
 0x1d7   :  { %177 = vbcast.lane.b32.xlu0 %v171_v15, 264 }
 0x1db   :  { %184 = vbcast.lane.b32.xlu0 %v182_v17, 256 }
 0x1df   :  { %188 = vbcast.lane.b32.xlu0 %v182_v17, 264 }
 0x1e3   :  { %195 = vbcast.lane.b32.xlu0 %v193_v19, 256 }
 0x1e7   :  { %199 = vbcast.lane.b32.xlu0 %v193_v19, 264 }
 0x241   :  { %v167_v30 = vpop.permute.xlu1 %166  ;;  %v163_v31 = vpop.permute.xlu0 %162 }
 0x242   :  { %v247_v32 = vadd.f32 %v229_v28, %v167_v30  ;;  %v246_v33 = vadd.f32 %v229_v28, %v163_v31 }
 0x244   :  { %v255_v34 = vmul.f32 0.2, %v247_v32  ;;  %v254_v35 = vmul.f32 0.2, %v246_v33 }
 0x245   :  { %v174_v37 = vpop.permute.xlu0 %173 }
 0x246   :  { %v263_v40 = vmax.f32 %v247_v32, %v255_v34  ;;  %v262_v41 = vmax.f32 %v246_v33, %v254_v35  ;;  %v248_v42 = vadd.f32 %v233_v36, %v174_v37 }
 0x248   :  { %v256_v43 = vmul.f32 0.2, %v248_v42  ;;  %v271_v44 = vadd.f32 %v263_v40, %v2192_v38  ;;  %v270_v45 = vadd.f32 %v262_v41, %v2197_v39 }
 0x249   :  { %v178_v47 = vpop.permute.xlu0 %177 }
 0x24a   :  { %v264_v48 = vmax.f32 %v248_v42, %v256_v43  ;;  %v249_v49 = vadd.f32 %v233_v36, %v178_v47  ;;  %v282_v50 = vsel %vm278_vm1, %v271_v44, -inf  ;;  %v279_v51 = vsel %vm278_vm1, %v270_v45, -inf }
 0x24b   :  { %283 = vmax.xlane.f32.xlu1 %v282_v50  ;;  %280 = vmax.xlane.f32.xlu0 %v279_v51 }
 0x24c   :  { %v257_v52 = vmul.f32 0.2, %v249_v49  ;;  %v272_v54 = vadd.f32 %v264_v48, %v2197_v39 }
 0x24d   :  { %v185_v55 = vpop.permute.xlu0 %184 }
 0x24e   :  { %v265_v56 = vmax.f32 %v249_v49, %v257_v52  ;;  %v250_v57 = vadd.f32 %v237_v53, %v185_v55  ;;  %v285_v58 = vsel %vm278_vm1, %v272_v54, -inf }
 0x24f   :  { %286 = vmax.xlane.f32.xlu0 %v285_v58 }
 0x250   :  { %v258_v59 = vmul.f32 0.2, %v250_v57  ;;  %v273_v60 = vadd.f32 %v265_v56, %v2192_v38 }
 0x251   :  { %v189_v62 = vpop.permute.xlu0 %188 }
 0x252   :  { %v266_v63 = vmax.f32 %v250_v57, %v258_v59  ;;  %v251_v0 = vadd.f32 %v237_v53, %v189_v62  ;;  %v288_v1 = vsel %vm278_vm1, %v273_v60, -inf }
 0x253   :  { %289 = vmax.xlane.f32.xlu0 %v288_v1 }
 0x254   :  { %v259_v2 = vmul.f32 0.2, %v251_v0  ;;  %v274_v4 = vadd.f32 %v266_v63, %v2197_v39 }
 0x255   :  { %v196_v5 = vpop.permute.xlu0 %195 }
 0x256   :  { %v267_v7 = vmax.f32 %v251_v0, %v259_v2  ;;  %v252_v8 = vadd.f32 %v241_v3, %v196_v5  ;;  %v291_v9 = vsel %vm278_vm1, %v274_v4, -inf }
 0x257   :  { %292 = vmax.xlane.f32.xlu1 %v291_v9 }
 0x258   :  { %v260_v12 = vmul.f32 0.2, %v252_v8  ;;  %v275_v13 = vadd.f32 %v267_v7, %v2192_v38 }
 0x259   :  { %v200_v15 = vpop.permute.xlu0 %199 }
 0x25a   :  { %v268_v17 = vmax.f32 %v252_v8, %v260_v12  ;;  %v253_v19 = vadd.f32 %v241_v3, %v200_v15  ;;  %v294_v20 = vsel %vm278_vm1, %v275_v13, -inf }
 0x25b   :  { %295 = vmax.xlane.f32.xlu0 %v294_v20 }
 0x25c   :  { %v261_v21 = vmul.f32 0.2, %v253_v19  ;;  %v276_v22 = vadd.f32 %v268_v17, %v2197_v39 }
 0x25e   :  { %v269_v24 = vmax.f32 %v253_v19, %v261_v21  ;;  %v297_v25 = vsel %vm278_vm1, %v276_v22, -inf }
 0x25f   :  { %298 = vmax.xlane.f32.xlu1 %v297_v25 }
 0x260   :  { %v277_v27 = vadd.f32 %v269_v24, %v2192_v38 }
 0x262   :  { %v300_v28 = vsel %vm278_vm1, %v277_v27, -inf }
 0x263   :  { %301 = vmax.xlane.f32.xlu0 %v300_v28 }
 0x270   :  { %1984 = vrot.lane.b32.xlu1 %v2161_v6, %s2097_s14 }
 0x2d8   :  { %v284_v29 = vpop.xlane.xlu1 %283  ;;  %v281_v30 = vpop.xlane.xlu0 %280 }
 0x2d9   :  { %v304_v31 = vsub.f32 %v271_v44, %v284_v29  ;;  %v303_v32 = vsub.f32 %v270_v45, %v281_v30 }
 0x2db   :  { %v313_v33 = vmul.f32 1.442695, %v304_v31  ;;  %v311_v34 = vmul.f32 1.442695, %v303_v32 }
 0x2dc   :  { %v287_v35 = vpop.xlane.xlu0 %286 }
 0x2dd   :  { %2013 = vpow2.f32 %v313_v33  ;;  %v305_v36 = vsub.f32 %v272_v54, %v287_v35 }
 0x2de   :  { %2015 = vpow2.f32 %v311_v34 }
 0x2df   :  { %v315_v37 = vmul.f32 1.442695, %v305_v36 }
 0x2e0   :  { %v290_v40 = vpop.xlane.xlu0 %289 }
 0x2e1   :  { %2017 = vpow2.f32 %v315_v37  ;;  %v306_v41 = vsub.f32 %v273_v60, %v290_v40 }
 0x2e3   :  { %v317_v42 = vmul.f32 1.442695, %v306_v41 }
 0x2e4   :  { %v293_v43 = vpop.xlane.xlu1 %292 }
 0x2e5   :  { %2019 = vpow2.f32 %v317_v42  ;;  %v307_v46 = vsub.f32 %v274_v4, %v293_v43 }
 0x2e7   :  { %v2014_v47 = vpop.eup %2013  ;;  %v319_v48 = vmul.f32 1.442695, %v307_v46 }
 0x2e8   :  { %v2016_v49 = vpop.eup %2015  ;;  %v296_v50 = vpop.xlane.xlu0 %295  ;;  %v330_v44 = vsel %vm278_vm1, %v2014_v47, 0.0 }
 0x2e9   :  { %2021 = vpow2.f32 %v319_v48  ;;  %v308_v45 = vsub.f32 %v275_v13, %v296_v50  ;;  %331 = vadd.xlane.f32.xlu0 %v330_v44  ;;  %v327_v51 = vsel %vm278_vm1, %v2016_v49, 0.0 }
 0x2ea   :  { %328 = vadd.xlane.f32.xlu1 %v327_v51 }
 0x2eb   :  { %v2018_v52 = vpop.eup %2017  ;;  %v321_v53 = vmul.f32 1.442695, %v308_v45 }
 0x2ec   :  { %v299_v54 = vpop.xlane.xlu1 %298  ;;  %v333_v55 = vsel %vm278_vm1, %v2018_v52, 0.0 }
 0x2ed   :  { %2023 = vpow2.f32 %v321_v53  ;;  %v309_v56 = vsub.f32 %v276_v22, %v299_v54 }
 0x2ee   :  { %334 = vadd.xlane.f32.xlu1 %v333_v55 }
 0x2ef   :  { %v2020_v57 = vpop.eup %2019  ;;  %v323_v58 = vmul.f32 1.442695, %v309_v56  ;;  %v758_v56 = vld [vmem:[%s2384_s4] sm:$0xff] }
 0x2f0   :  { %v1985_v59 = vpop.permute.xlu1 %1984  ;;  %v302_v60 = vpop.xlane.xlu0 %301  ;;  %v336_v61 = vsel %vm278_vm1, %v2020_v57, 0.0 }
 0x2f1   :  { %2025 = vpow2.f32 %v323_v58  ;;  %v1987_v62 = vunpack.i.h.bf16 %v1985_v59  ;;  %v1986_v63 = vunpack.i.l.bf16 %v1985_v59  ;;  %v310_v0 = vsub.f32 %v277_v27, %v302_v60  ;;  %337 = vadd.xlane.f32.xlu0 %v336_v61  ;;  %v760_v58 = vld [vmem:[%s2384_s4 + $0x10] sm:$0xff]  ;;  %v761_v61 = vld [vmem:[%s2384_s4 + $0x18] sm:$0xff] }
 0x2f3   :  { %v2022_v1 = vpop.eup %2021  ;;  %v1925_v2 = vpack.c.bf16 %v1987_v62, %v1986_v63  ;;  %v325_v3 = vmul.f32 1.442695, %v310_v0  ;;  %v1941_v0 = vpack.c.bf16 %v761_v61, %v760_v58 }
 0x2f4   :  { %v339_v4 = vsel %vm278_vm1, %v2022_v1, 0.0 }
 0x2f5   :  { %2027 = vpow2.f32 %v325_v3  ;;  %1926 = vmatprep.subr.bf16.mxu0 %v1925_v2  ;;  %340 = vadd.xlane.f32.xlu1 %v339_v4 }
 0x2f6   :  { %1928 = vmatpush3.bf16.msra.mxu0 %v1925_v2 }
 0x2f7   :  { %v2024_v5 = vpop.eup %2023 }
 0x2f8   :  { %v342_v7 = vsel %vm278_vm1, %v2024_v5, 0.0 }
 0x2f9   :  { %343 = vadd.xlane.f32.xlu0 %v342_v7 }
 0x2fb   :  { %v2026_v8 = vpop.eup %2025 }
 0x2fc   :  { %v345_v9 = vsel %vm278_vm1, %v2026_v8, 0.0 }
 0x2fd   :  { %346 = vadd.xlane.f32.xlu1 %v345_v9 }
 0x2ff   :  { %v2028_v12 = vpop.eup %2027 }
 0x300   :  { %v348_v13 = vsel %vm278_vm1, %v2028_v12, 0.0 }
 0x301   :  { %349 = vadd.xlane.f32.xlu0 %v348_v13 }
 0x30e   :  { %1994 = vrot.lane.b32.xlu1 %v2161_v6, %s2098_s15 }
 0x317   :  { %1989 = vrot.lane.b32.xlu0 %v2161_v6, %s2099_s16 }
 0x376   :  { %v332_v15 = vpop.xlane.xlu0 %331 }
 0x377   :  { %v329_v17 = vpop.xlane.xlu1 %328  ;;  %2029 = vrcp.f32 %v332_v15 }
 0x378   :  { %2031 = vrcp.f32 %v329_v17 }
 0x37b   :  { %v335_v19 = vpop.xlane.xlu1 %334 }
 0x37c   :  { %2033 = vrcp.f32 %v335_v19 }
 0x37e   :  { %v338_v20 = vpop.xlane.xlu0 %337 }
 0x37f   :  { %2035 = vrcp.f32 %v338_v20 }
 0x381   :  { %v2030_v21 = vpop.eup %2029 }
 0x382   :  { %v2032_v22 = vpop.eup %2031  ;;  %v341_v24 = vpop.xlane.xlu1 %340  ;;  %v360_v25 = vmul.f32 %v2030_v21, %v2014_v47 }
 0x383   :  { %2037 = vrcp.f32 %v341_v24  ;;  %v359_v27 = vmul.f32 %v2032_v22, %v2016_v49 }
 0x385   :  { %1840 = vmatprep.mubr.msk.f32.mxu1 %vm278_vm1, %v359_v27 }
 0x386   :  { %v2034_v28 = vpop.eup %2033  ;;  %1841 = vmatmul.mubr.msk.f32.vlgmr.msra.gmra.mrb[0].mxu1 %vm278_vm1, %v360_v25  ;;  %v344_v30 = vpop.xlane.xlu0 %343 }
 0x387   :  { %v361_v6 = vmul.f32 %v2034_v28, %v2018_v52 }
 0x389   :  { %v2036_v29 = vpop.eup %2035  ;;  %1847 = vmatprep.mubr.msk.f32.mxu0 %vm278_vm1, %v361_v6 }
 0x38a   :  { %v362_v31 = vmul.f32 %v2036_v29, %v2020_v57  ;;  %v347_v32 = vpop.xlane.xlu1 %346  ;;  %v759_v57 = vld [vmem:[%s2384_s4 + $0x8] sm:$0xff] }
 0x38b   :  { %2039 = vrcp.f32 %v347_v32  ;;  %v1937_v60 = vpack.c.bf16 %v759_v57, %v758_v56 }
 0x38c   :  { %2041 = vrcp.f32 %v344_v30  ;;  %1848 = vmatmul.mubr.msk.f32.vlgmr.msra.gmra.mrb[2].mxu0 %vm278_vm1, %v362_v31 }
 0x38d   :  { %v2038_v33 = vpop.eup %2037 }
 0x38e   :  { %v1995_v34 = vpop.permute.xlu1 %1994  ;;  %v350_v35 = vpop.xlane.xlu0 %349  ;;  %v363_v36 = vmul.f32 %v2038_v33, %v2022_v1 }
 0x38f   :  { %v1997_v37 = vunpack.i.h.bf16 %v1995_v34  ;;  %v1996_v40 = vunpack.i.l.bf16 %v1995_v34  ;;  %2043 = vrcp.f32 %v350_v35 }
 0x390   :  { %1854 = vmatprep.mubr.msk.f32.mxu1 %vm278_vm1, %v363_v36 }
 0x391   :  { %v1933_v41 = vpack.c.bf16 %v1997_v37, %v1996_v40 }
 0x392   :  { %v1990_v42 = vpop.permute.xlu0 %1989 }
 0x393   :  { %v1992_v43 = vunpack.i.h.bf16 %v1990_v42  ;;  %v1991_v46 = vunpack.i.l.bf16 %v1990_v42  ;;  %1934 = vmatprep.subr.bf16.mxu0 %v1933_v41 }
 0x394   :  { %1936 = vmatpush3.bf16.msra.mxu0 %v1933_v41 }
 0x395   :  { %v2040_v47 = vpop.eup %2039  ;;  %v1929_v48 = vpack.c.bf16 %v1992_v43, %v1991_v46 }
 0x396   :  { %v2042_v49 = vpop.eup %2041  ;;  %v365_v50 = vmul.f32 %v2040_v47, %v2026_v8  ;;  %v1759_v8 = vld [vmem:[%s2385_s3] ss:$0 sm:$0xff] }
 0x397   :  { %1930 = vmatprep.subr.bf16.mxu1 %v1929_v48  ;;  %v364_v45 = vmul.f32 %v2042_v49, %v2024_v5 }
 0x398   :  { %1932 = vmatpush3.bf16.msra.mxu1 %v1929_v48  ;;  %1861 = vmatprep.mubr.msk.f32.mxu0 %vm278_vm1, %v365_v50 }
 0x399   :  { %v2044_v44 = vpop.eup %2043  ;;  %1938 = vmatprep.subr.bf16.mxu1 %v1937_v60 }
 0x39a   :  { %v366_v51 = vmul.f32 %v2044_v44, %v2028_v12 }
 0x39b   :  { %1855 = vmatmul.mubr.msk.f32.vlgmr.msra.gmra.mrb[2].mxu1 %vm278_vm1, %v364_v45 }
 0x39c   :  { %1862 = vmatmul.mubr.msk.f32.vlgmr.msra.gmra.mrb[4].mxu0 %vm278_vm1, %v366_v51  ;;  %1940 = vmatpush3.bf16.msra.mxu1 %v1937_v60 }
 0x39d   :  { %1942 = vmatprep.subr.bf16.mxu1 %v1941_v0 }
 0x3a0   :  { %1944 = vmatpush3.bf16.msra.mxu1 %v1941_v0 }
 0x459   :  { %v1842_v52 = vpop.f32.mrb[0].mxu1 }
 0x45a   :  { %v439_v53 = vpop.f32.mrb[1].mxu1 }
 0x45f   :  { %v1849_v54 = vpop.f32.mrb[2].mxu0 }
 0x460   :  { %713 = vrot.lane.b32.xlu0 %v1849_v54, %s2100_s17  ;;  %v526_v55 = vpop.f32.mrb[3].mxu0 }
 0x461   :  { %711 = vrot.lane.b32.xlu1 %v526_v55, %s2100_s17 }
 0x46e   :  { %v1856_v59 = vpop.f32.mrb[2].mxu1 }
 0x46f   :  { %v1863_v62 = vpop.f32.mrb[4].mxu0  ;;  %721 = vrot.lane.b32.xlu0 %v1856_v59, %s2101_s26  ;;  %v613_v63 = vpop.f32.mrb[3].mxu1 }
 0x470   :  { %v700_v1 = vpop.f32.mrb[5].mxu0  ;;  %719 = vrot.lane.b32.xlu1 %v613_v63, %s2101_s26 }
 0x473   :  { %729 = vrot.lane.b32.xlu0 %v1863_v62, %s2102_s27 }
 0x474   :  { %727 = vrot.lane.b32.xlu1 %v700_v1, %s2102_s27 }
 0x4d2   :  { %v714_v2 = vpop.permute.xlu0 %713 }
 0x4d3   :  { %v712_v3 = vpop.permute.xlu1 %711  ;;  %v734_v7 = vsel %vm35_vm0, %v1842_v52, %v714_v2 }
 0x4d4   :  { %v733_v9 = vsel %vm35_vm0, %v439_v53, %v712_v3 }
 0x4e1   :  { %v722_v4 = vpop.permute.xlu0 %721 }
 0x4e2   :  { %v720_v5 = vpop.permute.xlu1 %719  ;;  %v736_v12 = vsel %vm278_vm1, %v734_v7, %v722_v4 }
 0x4e3   :  { %v735_v15 = vsel %vm278_vm1, %v733_v9, %v720_v5 }
 0x4e5   :  { %v730_v13 = vpop.permute.xlu0 %729 }
 0x4e6   :  { %v739_v17 = vsel %vm737_vm2, %v736_v12, %v730_v13  ;;  %v728_v19 = vpop.permute.xlu1 %727 }
 0x4e7   :  { %v747_v20 = vadd.f32 %v1759_v8, %v739_v17  ;;  %v738_v21 = vsel %vm737_vm2, %v735_v15, %v728_v19 }
 0x4e8   :  { %v746_v22 = vadd.f32 %v1759_v8, %v738_v21 }
 0x4e9   :  { %v752_v24 = vmul.f32 1.442695, %v747_v20  ;;  %vm749_vm5 = vcmp.gt.f32.partialorder %v747_v20, 0.0 }
 0x4ea   :  { %v750_v25 = vmul.f32 1.442695, %v746_v22  ;;  %vm748_vm4 = vcmp.gt.f32.partialorder %v746_v22, 0.0 }
 0x4eb   :  { %2045 = vpow2.f32 %v752_v24 }
 0x4ec   :  { %2047 = vpow2.f32 %v750_v25 }
 0x4f5   :  { %v2046_v27 = vpop.eup %2045 }
 0x4f6   :  { %v2048_v28 = vpop.eup %2047  ;;  %v1761_v6 = vadd.f32 -1.0, %v2046_v27 }
 0x4f7   :  { %v1760_v29 = vadd.f32 -1.0, %v2048_v28 }
 0x4f8   :  { %v757_v31 = vsel %vm749_vm5, %v747_v20, %v1761_v6 }
 0x4f9   :  { %v756_v30 = vsel %vm748_vm4, %v746_v22, %v1760_v29 }
 0x4fa   :  { %1872 = vmatprep.mubr.msk.f32.mxu1 %vm763_vm3, %v756_v30 }
 0x4fb   :  { %1873 = vmatmul.mubr.msk.f32.vlgmr.msra.gmra.mrb[4].mxu1 %vm763_vm3, %v757_v31 }
 0x5ce   :  { %v1874_v32 = vpop.f32.mrb[4].mxu1 }
 0x5cf   :  { %849 = vrot.lane.b32.xlu0 %v1874_v32, %s2095_s11  ;;  %v836_v33 = vpop.f32.mrb[5].mxu1 }
 0x5d0   :  { %847 = vrot.lane.b32.xlu1 %v836_v33, %s2095_s11  ;;  %v1945_v34 = vpack.c.bf16 %v1874_v32, %v836_v33  ;;  %v2270_v35 = vpack.i.bf16 %v1874_v32, %v836_v33 }
 0x5d2   :  { %1946 = vmatprep.subr.bf16.mxu0 %v1945_v34 }
 0x5d3   :  { %1948 = vmatpush3.bf16.msra.mxu0 %v1945_v34 }
 0x641   :  { %v850_v37 = vpop.permute.xlu0 %849 }
 0x642   :  { %v848_v36 = vpop.permute.xlu1 %847 }
 0x643   :  { %853 = vxpose.xlu1.b32.start [1/2] (short) (narrow) %v848_v36, 8 }
 0x647   :  { %854 = vxpose.xlu1.b32.end [2/2] (short) (narrow) %v850_v37, 8 }
 0x6c3   :  { %v869_v40 = vpop.trf.xlu1 }
 0x6c4   :  { %v888_v41 = vrot.slane %v869_v40, %v159_v11  ;;  %v899_v42 = vrot.slane %v869_v40, %v170_v14  ;;  %v910_v43 = vrot.slane %v869_v40, %v181_v16  ;;  %v921_v46 = vrot.slane %v869_v40, %v192_v18 }
 0x6c5   :  { %v936_v47 = vrot.slane %v869_v40, %v2179_v23 }
 0x6c6   :  { %890 = vbcast.lane.b32.xlu0 %v888_v41, 256 }
 0x6c7   :  { %v944_v11 = vrot.slane %v936_v47, %v2179_v23  ;;  %v937_v49 = vcombine.high %v936_v47, %v936_v47 }
 0x6c9   :  { %v957_v48 = vrot.slane %v944_v11, %v2184_v26  ;;  %v951_v45 = vrot.slane %v937_v49, %v2179_v23  ;;  %v952_v61 = vcombine.high %v944_v11, %v944_v11 }
 0x6ca   :  { %894 = vbcast.lane.b32.xlu0 %v888_v41, 264 }
 0x6cb   :  { %v961_v18 = vrot.slane %v951_v45, %v2184_v26  ;;  %v965_v2 = vrot.slane %v952_v61, %v2184_v26  ;;  %v953_v13 = vcombine.high %v951_v45, %v951_v45 }
 0x6cd   :  { %v969_v22 = vrot.slane %v953_v13, %v2184_v26 }
 0x6ce   :  { %901 = vbcast.lane.b32.xlu0 %v899_v42, 256 }
 0x6d2   :  { %905 = vbcast.lane.b32.xlu0 %v899_v42, 264 }
 0x6d6   :  { %912 = vbcast.lane.b32.xlu0 %v910_v43, 256 }
 0x6da   :  { %916 = vbcast.lane.b32.xlu0 %v910_v43, 264 }
 0x6de   :  { %923 = vbcast.lane.b32.xlu0 %v921_v46, 256 }
 0x6e2   :  { %927 = vbcast.lane.b32.xlu0 %v921_v46, 264 }
 0x738   :  { %v891_v14 = vpop.permute.xlu0 %890 }
 0x739   :  { %v974_v50 = vadd.f32 %v957_v48, %v891_v14 }
 0x73b   :  { %v982_v44 = vmul.f32 0.2, %v974_v50 }
 0x73c   :  { %v895_v16 = vpop.permute.xlu0 %894 }
 0x73d   :  { %v990_v51 = vmax.f32 %v974_v50, %v982_v44  ;;  %v975_v52 = vadd.f32 %v957_v48, %v895_v16 }
 0x73f   :  { %v983_v53 = vmul.f32 0.2, %v975_v52  ;;  %v998_v54 = vadd.f32 %v990_v51, %v2197_v39 }
 0x740   :  { %v902_v55 = vpop.permute.xlu0 %901 }
 0x741   :  { %v991_v56 = vmax.f32 %v975_v52, %v983_v53  ;;  %v976_v57 = vadd.f32 %v961_v18, %v902_v55  ;;  %v1006_v58 = vsel %vm278_vm1, %v998_v54, -inf }
 0x742   :  { %1007 = vmax.xlane.f32.xlu0 %v1006_v58 }
 0x743   :  { %v984_v59 = vmul.f32 0.2, %v976_v57  ;;  %v999_v60 = vadd.f32 %v991_v56, %v2192_v38 }
 0x744   :  { %v906_v62 = vpop.permute.xlu0 %905 }
 0x745   :  { %v992_v23 = vmax.f32 %v976_v57, %v984_v59  ;;  %v977_v63 = vadd.f32 %v961_v18, %v906_v62  ;;  %v1009_v0 = vsel %vm278_vm1, %v999_v60, -inf }
 0x746   :  { %1010 = vmax.xlane.f32.xlu1 %v1009_v0 }
 0x747   :  { %v985_v1 = vmul.f32 0.2, %v977_v63  ;;  %v1000_v3 = vadd.f32 %v992_v23, %v2197_v39 }
 0x748   :  { %v913_v4 = vpop.permute.xlu0 %912 }
 0x749   :  { %v993_v5 = vmax.f32 %v977_v63, %v985_v1  ;;  %v978_v7 = vadd.f32 %v965_v2, %v913_v4  ;;  %v1012_v8 = vsel %vm278_vm1, %v1000_v3, -inf }
 0x74a   :  { %1013 = vmax.xlane.f32.xlu0 %v1012_v8 }
 0x74b   :  { %v986_v9 = vmul.f32 0.2, %v978_v7  ;;  %v1001_v12 = vadd.f32 %v993_v5, %v2192_v38 }
 0x74c   :  { %v917_v15 = vpop.permute.xlu0 %916 }
 0x74d   :  { %v994_v17 = vmax.f32 %v978_v7, %v986_v9  ;;  %v979_v19 = vadd.f32 %v965_v2, %v917_v15  ;;  %v1015_v20 = vsel %vm278_vm1, %v1001_v12, -inf }
 0x74e   :  { %1016 = vmax.xlane.f32.xlu0 %v1015_v20 }
 0x74f   :  { %v987_v21 = vmul.f32 0.2, %v979_v19  ;;  %v1002_v24 = vadd.f32 %v994_v17, %v2197_v39 }
 0x750   :  { %v924_v25 = vpop.permute.xlu0 %923 }
 0x751   :  { %v995_v27 = vmax.f32 %v979_v19, %v987_v21  ;;  %v980_v28 = vadd.f32 %v969_v22, %v924_v25  ;;  %v1018_v6 = vsel %vm278_vm1, %v1002_v24, -inf }
 0x752   :  { %1019 = vmax.xlane.f32.xlu0 %v1018_v6 }
 0x753   :  { %v988_v29 = vmul.f32 0.2, %v980_v28  ;;  %v1003_v30 = vadd.f32 %v995_v27, %v2192_v38 }
 0x754   :  { %v928_v31 = vpop.permute.xlu0 %927 }
 0x755   :  { %v996_v32 = vmax.f32 %v980_v28, %v988_v29  ;;  %v981_v33 = vadd.f32 %v969_v22, %v928_v31  ;;  %v1021_v34 = vsel %vm278_vm1, %v1003_v30, -inf }
 0x756   :  { %1022 = vmax.xlane.f32.xlu0 %v1021_v34 }
 0x757   :  { %v989_v36 = vmul.f32 0.2, %v981_v33  ;;  %v1004_v37 = vadd.f32 %v996_v32, %v2197_v39 }
 0x759   :  { %v997_v40 = vmax.f32 %v981_v33, %v989_v36  ;;  %v1024_v41 = vsel %vm278_vm1, %v1004_v37, -inf }
 0x75a   :  { %1025 = vmax.xlane.f32.xlu0 %v1024_v41 }
 0x75b   :  { %v1005_v42 = vadd.f32 %v997_v40, %v2192_v38 }
 0x75d   :  { %v1027_v43 = vsel %vm278_vm1, %v1005_v42, -inf }
 0x75e   :  { %1028 = vmax.xlane.f32.xlu1 %v1027_v43 }
 0x7cf   :  { %v1008_v46 = vpop.xlane.xlu0 %1007 }
 0x7d0   :  { %v1030_v47 = vsub.f32 %v998_v54, %v1008_v46 }
 0x7d2   :  { %v1038_v11 = vmul.f32 1.442695, %v1030_v47 }
 0x7d3   :  { %v1011_v48 = vpop.xlane.xlu1 %1010 }
 0x7d4   :  { %2049 = vpow2.f32 %v1038_v11  ;;  %v1031_v49 = vsub.f32 %v999_v60, %v1011_v48 }
 0x7d6   :  { %v1040_v14 = vmul.f32 1.442695, %v1031_v49 }
 0x7d7   :  { %v1014_v50 = vpop.xlane.xlu0 %1013 }
 0x7d8   :  { %2051 = vpow2.f32 %v1040_v14  ;;  %v1032_v44 = vsub.f32 %v1000_v3, %v1014_v50 }
 0x7da   :  { %v1042_v39 = vmul.f32 1.442695, %v1032_v44 }
 0x7db   :  { %v1017_v45 = vpop.xlane.xlu0 %1016 }
 0x7dc   :  { %2053 = vpow2.f32 %v1042_v39  ;;  %v1033_v16 = vsub.f32 %v1001_v12, %v1017_v45 }
 0x7de   :  { %v2050_v51 = vpop.eup %2049  ;;  %v1044_v52 = vmul.f32 1.442695, %v1033_v16 }
 0x7df   :  { %v1020_v38 = vpop.xlane.xlu0 %1019  ;;  %v1054_v53 = vsel %vm278_vm1, %v2050_v51, 0.0 }
 0x7e0   :  { %2055 = vpow2.f32 %v1044_v52  ;;  %v1034_v18 = vsub.f32 %v1002_v24, %v1020_v38  ;;  %1055 = vadd.xlane.f32.xlu0 %v1054_v53 }
 0x7e2   :  { %v2052_v54 = vpop.eup %2051  ;;  %v1046_v55 = vmul.f32 1.442695, %v1034_v18 }
 0x7e3   :  { %v1023_v56 = vpop.xlane.xlu0 %1022  ;;  %v1057_v57 = vsel %vm278_vm1, %v2052_v54, 0.0 }
 0x7e4   :  { %2057 = vpow2.f32 %v1046_v55  ;;  %v1035_v58 = vsub.f32 %v1003_v30, %v1023_v56  ;;  %1058 = vadd.xlane.f32.xlu1 %v1057_v57 }
 0x7e6   :  { %v2054_v59 = vpop.eup %2053  ;;  %v1048_v60 = vmul.f32 1.442695, %v1035_v58  ;;  %v1484_v58 = vld [vmem:[%s2386_s6] sm:$0xff] }
 0x7e7   :  { %v1026_v61 = vpop.xlane.xlu0 %1025  ;;  %v1060_v62 = vsel %vm278_vm1, %v2054_v59, 0.0 }
 0x7e8   :  { %2059 = vpow2.f32 %v1048_v60  ;;  %v1036_v23 = vsub.f32 %v1004_v37, %v1026_v61  ;;  %1061 = vadd.xlane.f32.xlu0 %v1060_v62  ;;  %v1486_v60 = vld [vmem:[%s2386_s6 + $0x10] sm:$0xff]  ;;  %v1487_v62 = vld [vmem:[%s2386_s6 + $0x18] sm:$0xff] }
 0x7ea   :  { %v2306_v63 = vpop.eup %2055  ;;  %v1050_v0 = vmul.f32 1.442695, %v1036_v23  ;;  %v1965_v23 = vpack.c.bf16 %v1487_v62, %v1486_v60 }
 0x7eb   :  { %v1063_v1 = vsel %vm278_vm1, %v2306_v63, 0.0  ;;  %v1029_v9 = vpop.xlane.xlu1 %1028 }
 0x7ec   :  { %2061 = vpow2.f32 %v1050_v0  ;;  %1064 = vadd.xlane.f32.xlu1 %v1063_v1  ;;  %v1037_v12 = vsub.f32 %v1005_v42, %v1029_v9 }
 0x7ee   :  { %v2058_v2 = vpop.eup %2057  ;;  %v1052_v13 = vmul.f32 1.442695, %v1037_v12 }
 0x7ef   :  { %v1066_v3 = vsel %vm278_vm1, %v2058_v2, 0.0 }
 0x7f0   :  { %1067 = vadd.xlane.f32.xlu0 %v1066_v3  ;;  %2063 = vpow2.f32 %v1052_v13 }
 0x7f2   :  { %v2060_v4 = vpop.eup %2059 }
 0x7f3   :  { %v1069_v5 = vsel %vm278_vm1, %v2060_v4, 0.0 }
 0x7f4   :  { %1070 = vadd.xlane.f32.xlu1 %v1069_v5 }
 0x7f6   :  { %v2062_v7 = vpop.eup %2061 }
 0x7f7   :  { %v1072_v8 = vsel %vm278_vm1, %v2062_v7, 0.0 }
 0x7f8   :  { %1073 = vadd.xlane.f32.xlu0 %v1072_v8  ;;  %v1772_v8 = vld [vmem:[%s2387_s5] ss:$0 sm:$0xff]  ;;  %s2103_s5 = smov 124  }
 0x7fa   :  { %v2064_v15 = vpop.eup %2063 }
 0x7fb   :  { %v1075_v17 = vsel %vm278_vm1, %v2064_v15, 0.0 }
 0x805   :  { %2004 = vrot.lane.b32.xlu1 %v2270_v35, %s2099_s16 }
 0x80e   :  { %1999 = vrot.lane.b32.xlu0 %v2270_v35, %s2097_s14 }
 0x829   :  { %1076 = vadd.xlane.f32.xlu1 %v1075_v17 }
 0x83a   :  { %2009 = vrot.lane.b32.xlu1 %v2270_v35, %s2098_s15 }
 0x86d   :  { %v1056_v19 = vpop.xlane.xlu0 %1055 }
 0x86e   :  { %2065 = vrcp.f32 %v1056_v19 }
 0x871   :  { %v1059_v20 = vpop.xlane.xlu1 %1058 }
 0x872   :  { %2067 = vrcp.f32 %v1059_v20 }
 0x875   :  { %v1062_v21 = vpop.xlane.xlu0 %1061 }
 0x876   :  { %2069 = vrcp.f32 %v1062_v21 }
 0x878   :  { %v2066_v22 = vpop.eup %2065 }
 0x879   :  { %v1086_v24 = vmul.f32 %v2066_v22, %v2050_v51  ;;  %v1065_v28 = vpop.xlane.xlu1 %1064 }
 0x87b   :  { %1879 = vmatprep.mubr.msk.f32.mxu0 %vm278_vm1, %v1086_v24 }
 0x87c   :  { %v2068_v25 = vpop.eup %2067 }
 0x87d   :  { %v1087_v27 = vmul.f32 %v2068_v25, %v2052_v54  ;;  %v1068_v6 = vpop.xlane.xlu0 %1067 }
 0x87e   :  { %2071 = vrcp.f32 %v1068_v6 }
 0x87f   :  { %1880 = vmatmul.mubr.msk.f32.vlgmr.msra.gmra.mrb[6].mxu0 %vm278_vm1, %v1087_v27 }
 0x880   :  { %v2070_v29 = vpop.eup %2069 }
 0x881   :  { %v1071_v30 = vpop.xlane.xlu1 %1070  ;;  %v1088_v35 = vmul.f32 %v2070_v29, %v2054_v59  ;;  %v1485_v59 = vld [vmem:[%s2386_s6 + $0x8] sm:$0xff] }
 0x882   :  { %2073 = vrcp.f32 %v1071_v30  ;;  %v1961_v61 = vpack.c.bf16 %v1485_v59, %v1484_v58 }
 0x883   :  { %2075 = vrcp.f32 %v1065_v28  ;;  %1886 = vmatprep.mubr.msk.f32.mxu0 %vm278_vm1, %v1088_v35 }
 0x885   :  { %v2005_v31 = vpop.permute.xlu1 %2004  ;;  %v1074_v32 = vpop.xlane.xlu0 %1073 }
 0x886   :  { %v2007_v33 = vunpack.i.h.bf16 %v2005_v31  ;;  %v2006_v34 = vunpack.i.l.bf16 %v2005_v31  ;;  %2077 = vrcp.f32 %v1074_v32 }
 0x888   :  { %v2072_v36 = vpop.eup %2071  ;;  %v1953_v37 = vpack.c.bf16 %v2007_v33, %v2006_v34 }
 0x889   :  { %v2000_v40 = vpop.permute.xlu0 %1999  ;;  %v1090_v41 = vmul.f32 %v2072_v36, %v2058_v2  ;;  %v1612_v36 = vsub.s32 1, %v2164_v10 }
 0x88a   :  { %v2002_v42 = vunpack.i.h.bf16 %v2000_v40  ;;  %v2001_v43 = vunpack.i.l.bf16 %v2000_v40  ;;  %1954 = vmatprep.subr.bf16.mxu1 %v1953_v37 }
 0x88b   :  { %1956 = vmatpush3.bf16.msra.mxu1 %v1953_v37  ;;  %1893 = vmatprep.mubr.msk.f32.mxu1 %vm278_vm1, %v1090_v41 }
 0x88c   :  { %v2074_v46 = vpop.eup %2073  ;;  %v1949_v47 = vpack.c.bf16 %v2002_v42, %v2001_v43  ;;  %1962 = vmatprep.subr.bf16.mxu1 %v1961_v61 }
 0x88d   :  { %v2076_v11 = vpop.eup %2075  ;;  %v1091_v48 = vmul.f32 %v2074_v46, %v2060_v4 }
 0x88e   :  { %1950 = vmatprep.subr.bf16.mxu0 %v1949_v47  ;;  %v1089_v14 = vmul.f32 %v2076_v11, %v2306_v63 }
 0x88f   :  { %1952 = vmatpush3.bf16.msra.mxu0 %v1949_v47  ;;  %1894 = vmatmul.mubr.msk.f32.vlgmr.msra.gmra.mrb[6].mxu1 %vm278_vm1, %v1091_v48 }
 0x890   :  { %v2078_v49 = vpop.eup %2077  ;;  %1964 = vmatpush3.bf16.msra.mxu1 %v1961_v61 }
 0x891   :  { %v1092_v50 = vmul.f32 %v2078_v49, %v2062_v7  ;;  %1966 = vmatprep.subr.bf16.mxu1 %v1965_v23 }
 0x892   :  { %1887 = vmatmul.mubr.msk.f32.vlgmr.msra.gmra.mrb[8].mxu0 %vm278_vm1, %v1089_v14  ;;  %v2093_v14 = vld [vmem:[%s2383_s1] sm:$0xff] }
 0x893   :  { %1900 = vmatprep.mubr.msk.f32.mxu0 %vm278_vm1, %v1092_v50 }
 0x894   :  { %1968 = vmatpush3.bf16.msra.mxu1 %v1965_v23 }
 0x8b6   :  { %v1077_v44 = vpop.xlane.xlu1 %1076 }
 0x8b7   :  { %2079 = vrcp.f32 %v1077_v44 }
 0x8ba   :  { %v2010_v39 = vpop.permute.xlu1 %2009 }
 0x8bb   :  { %v2012_v45 = vunpack.i.h.bf16 %v2010_v39  ;;  %v2011_v16 = vunpack.i.l.bf16 %v2010_v39 }
 0x8bd   :  { %v1957_v51 = vpack.c.bf16 %v2012_v45, %v2011_v16 }
 0x8bf   :  { %1958 = vmatprep.subr.bf16.mxu0 %v1957_v51 }
 0x8c0   :  { %1960 = vmatpush3.bf16.msra.mxu0 %v1957_v51 }
 0x8c1   :  { %v2080_v52 = vpop.eup %2079 }
 0x8c2   :  { %v1093_v38 = vmul.f32 %v2080_v52, %v2064_v15 }
 0x8c4   :  { %1901 = vmatmul.mubr.msk.f32.vlgmr.msra.gmra.mrb[10].mxu0 %vm278_vm1, %v1093_v38 }
 0x952   :  { %v1881_v53 = vpop.f32.mrb[6].mxu0 }
 0x953   :  { %v1166_v18 = vpop.f32.mrb[7].mxu0 }
 0x962   :  { %v1895_v54 = vpop.f32.mrb[6].mxu1 }
 0x963   :  { %1448 = vrot.lane.b32.xlu1 %v1895_v54, %s2101_s26  ;;  %v1340_v55 = vpop.f32.mrb[7].mxu1 }
 0x964   :  { %1446 = vrot.lane.b32.xlu0 %v1340_v55, %s2101_s26 }
 0x965   :  { %v1888_v56 = vpop.f32.mrb[8].mxu0 }
 0x966   :  { %v1253_v57 = vpop.f32.mrb[9].mxu0 }
 0x967   :  { %1440 = vrot.lane.b32.xlu1 %v1888_v56, %s2100_s17 }
 0x968   :  { %1438 = vrot.lane.b32.xlu0 %v1253_v57, %s2100_s17 }
 0x997   :  { %v1902_v63 = vpop.f32.mrb[10].mxu0 }
 0x998   :  { %1456 = vrot.lane.b32.xlu1 %v1902_v63, %s2102_s27  ;;  %v1427_v0 = vpop.f32.mrb[11].mxu0  ;;  %v1777_v63 = vld [vmem:[%s2388_s7] ss:$0 sm:$0xff] }
 0x999   :  { %1454 = vrot.lane.b32.xlu0 %v1427_v0, %s2102_s27 }
 0x9d5   :  { %v1449_v1 = vpop.permute.xlu1 %1448 }
 0x9d6   :  { %v1447_v2 = vpop.permute.xlu0 %1446 }
 0x9d9   :  { %v1441_v3 = vpop.permute.xlu1 %1440 }
 0x9da   :  { %v1439_v4 = vpop.permute.xlu0 %1438  ;;  %v1461_v5 = vsel %vm35_vm0, %v1881_v53, %v1441_v3 }
 0x9db   :  { %v1460_v7 = vsel %vm35_vm0, %v1166_v18, %v1439_v4  ;;  %v1463_v9 = vsel %vm278_vm1, %v1461_v5, %v1449_v1 }
 0x9dc   :  { %v1462_v15 = vsel %vm278_vm1, %v1460_v7, %v1447_v2 }
 0xa0a   :  { %v1457_v12 = vpop.permute.xlu1 %1456 }
 0xa0b   :  { %v1465_v13 = vsel %vm737_vm2, %v1463_v9, %v1457_v12  ;;  %v1455_v17 = vpop.permute.xlu0 %1454 }
 0xa0c   :  { %v1473_v19 = vadd.f32 %v1772_v8, %v1465_v13  ;;  %v1464_v20 = vsel %vm737_vm2, %v1462_v15, %v1455_v17 }
 0xa0d   :  { %v1472_v21 = vadd.f32 %v1772_v8, %v1464_v20 }
 0xa0e   :  { %v1478_v22 = vmul.f32 1.442695, %v1473_v19  ;;  %vm1475_vm7 = vcmp.gt.f32.partialorder %v1473_v19, 0.0 }
 0xa0f   :  { %v1476_v24 = vmul.f32 1.442695, %v1472_v21  ;;  %vm1474_vm6 = vcmp.gt.f32.partialorder %v1472_v21, 0.0 }
 0xa10   :  { %2081 = vpow2.f32 %v1478_v22 }
 0xa11   :  { %2083 = vpow2.f32 %v1476_v24 }
 0xa1a   :  { %v2082_v25 = vpop.eup %2081 }
 0xa1b   :  { %v2084_v27 = vpop.eup %2083  ;;  %v1774_v28 = vadd.f32 -1.0, %v2082_v25 }
 0xa1c   :  { %v1773_v6 = vadd.f32 -1.0, %v2084_v27 }
 0xa1d   :  { %v1483_v30 = vsel %vm1475_vm7, %v1473_v19, %v1774_v28 }
 0xa1e   :  { %v1482_v29 = vsel %vm1474_vm6, %v1472_v21, %v1773_v6 }
 0xa1f   :  { %1911 = vmatprep.mubr.msk.f32.mxu1 %vm763_vm3, %v1482_v29 }
 0xa20   :  { %1912 = vmatmul.mubr.msk.f32.vlgmr.msra.gmra.mrb[8].mxu1 %vm763_vm3, %v1483_v30 }
 0xaf3   :  { %v1913_v35 = vpop.f32.mrb[8].mxu1 }
 0xaf4   :  { %1574 = vrot.lane.b32.xlu1 %v1913_v35, %s2103_s5  ;;  %v1561_v31 = vpop.f32.mrb[9].mxu1 }
 0xaf5   :  { %v1969_v32 = vpack.c.bf16 %v1913_v35, %v1561_v31  ;;  %1572 = vrot.lane.b32.xlu0 %v1561_v31, %s2103_s5 }
 0xaf7   :  { %1970 = vmatprep.subr.bf16.mxu0 %v1969_v32 }
 0xaf8   :  { %1972 = vmatpush3.bf16.msra.mxu0 %v1969_v32 }
 0xb66   :  { %v1575_v34 = vpop.permute.xlu1 %1574 }
 0xb67   :  { %v1573_v33 = vpop.permute.xlu0 %1572 }
 0xb68   :  { %1578 = vxpose.xlu0.b32.start [1/2] (short) (narrow) %v1573_v33, 8 }
 0xb6c   :  { %1579 = vxpose.xlu0.b32.end [2/2] (short) (narrow) %v1575_v34, 8 }
 0xbe8   :  { %v1594_v37 = vpop.trf.xlu0 }
 0xbe9   :  { %v1613_v40 = vrot.slane %v1594_v37, %v1612_v36  ;;  %v1624_v41 = vrot.slane %v1594_v37, %v2184_v26  ;;  %v2094_v26 = vld [vmem:[%s2383_s1 + $0x8] sm:$0xff] }
 0xbeb   :  { %1615 = vbcast.lane.b32.xlu1 %v1613_v40, 256 }
 0xbef   :  { %1619 = vbcast.lane.b32.xlu1 %v1613_v40, 264 }
 0xc5d   :  { %v1616_v42 = vpop.permute.xlu1 %1615 }
 0xc5e   :  { %v1625_v43 = vadd.f32 %v1624_v41, %v1616_v42 }
 0xc60   :  { %v1627_v46 = vmul.f32 0.2, %v1625_v43 }
 0xc61   :  { %v1620_v47 = vpop.permute.xlu1 %1619 }
 0xc62   :  { %v1629_v11 = vmax.f32 %v1625_v43, %v1627_v46  ;;  %v1626_v48 = vadd.f32 %v1624_v41, %v1620_v47 }
 0xc64   :  { %v1628_v49 = vmul.f32 0.2, %v1626_v48  ;;  %v1631_v50 = vadd.f32 %v2093_v14, %v1629_v11 }
 0xc66   :  { %v1630_v44 = vmax.f32 %v1626_v48, %v1628_v49  ;;  %v1633_v10 = vsel %vm278_vm1, %v1631_v50, -inf }
 0xc67   :  { %1634 = vmax.xlane.f32.xlu1 %v1633_v10 }
 0xc68   :  { %v1632_v39 = vadd.f32 %v2094_v26, %v1630_v44 }
 0xc6a   :  { %v1636_v45 = vsel %vm278_vm1, %v1632_v39, -inf }
 0xc6b   :  { %1637 = vmax.xlane.f32.xlu0 %v1636_v45 }
 0xcf4   :  { %v1635_v16 = vpop.xlane.xlu1 %1634 }
 0xcf5   :  { %v1639_v51 = vsub.f32 %v1631_v50, %v1635_v16 }
 0xcf7   :  { %v1641_v52 = vmul.f32 1.442695, %v1639_v51 }
 0xcf8   :  { %v1638_v38 = vpop.xlane.xlu0 %1637 }
 0xcf9   :  { %2085 = vpow2.f32 %v1641_v52  ;;  %v1640_v53 = vsub.f32 %v1632_v39, %v1638_v38 }
 0xcfb   :  { %v1643_v18 = vmul.f32 1.442695, %v1640_v53 }
 0xcfd   :  { %2087 = vpow2.f32 %v1643_v18 }
 0xd03   :  { %v2086_v54 = vpop.eup %2085 }
 0xd04   :  { %v1645_v55 = vsel %vm278_vm1, %v2086_v54, 0.0 }
 0xd05   :  { %1646 = vadd.xlane.f32.xlu1 %v1645_v55 }
 0xd07   :  { %v2088_v56 = vpop.eup %2087 }
 0xd08   :  { %v1648_v57 = vsel %vm278_vm1, %v2088_v56, 0.0 }
 0xd09   :  { %1649 = vadd.xlane.f32.xlu1 %v1648_v57 }
 0xd92   :  { %v1647_v58 = vpop.xlane.xlu1 %1646 }
 0xd93   :  { %2089 = vrcp.f32 %v1647_v58 }
 0xd96   :  { %v1650_v59 = vpop.xlane.xlu1 %1649 }
 0xd97   :  { %2091 = vrcp.f32 %v1650_v59 }
 0xd9d   :  { %v2090_v60 = vpop.eup %2089 }
 0xd9e   :  { %v1653_v61 = vmul.f32 %v2090_v60, %v2086_v54 }
 0xda0   :  { %1918 = vmatprep.mubr.msk.f32.mxu0 %vm278_vm1, %v1653_v61 }
 0xda1   :  { %v2092_v62 = vpop.eup %2091 }
 0xda2   :  { %v1654_v23 = vmul.f32 %v2092_v62, %v2088_v56 }
 0xda4   :  { %1919 = vmatmul.mubr.msk.f32.vlgmr.msra.gmra.mrb[12].mxu0 %vm278_vm1, %v1654_v23 }
 0xe77   :  { %v1920_v0 = vpop.f32.mrb[12].mxu0 }
 0xe78   :  { %v1739_v1 = vadd.f32 %v1920_v0, %v1777_v63  ;;  %v1733_v2 = vpop.f32.mrb[13].mxu0 }
 0xe79   :  { %v1734_v3 = vadd.f32 %v1777_v63, %v1733_v2 }
 0xe7a   :  { %1744 = vst.msk [vmem:[%s2389_s8 + $0x8] sm:$0xff] %vm1742_vm8, %v1739_v1 }
 0xe7b   :  { %1743 = vst.msk [vmem:[%s2389_s8] sm:$0xff] %vm1742_vm8, %v1734_v3 }

</bundles_post_ra>
